<compile_context>
chip_gen: v7x
topology: tpu7x:2x2x1
jax: 0.10.0
libtpu: 0.0.40
codegen_flags: <defaults>
</compile_context>

<pallas_src>
import math
import functools

import jax
import jax.numpy as jnp
from jax.experimental import pallas as pl
from jax.experimental.pallas import tpu as pltpu

_LANE = 128
_SUBLANE = 8


def _sh_components(x, y, z, levels):
    """components_from_spherical_harmonics (nerfstudio) as a list of arrays."""
    comps = [jnp.full_like(x, 0.28209479177387814)]
    if levels > 1:
        comps += [
            0.4886025119029199 * y,
            0.4886025119029199 * z,
            0.4886025119029199 * x,
        ]
    if levels > 2:
        xx, yy, zz = x * x, y * y, z * z          # hoisted once, reused by l=3 band
        comps += [
            1.0925484305920792 * x * y,
            1.0925484305920792 * y * z,
            0.9461746957575601 * zz - 0.31539156525251999,
            1.0925484305920792 * x * z,
            0.5462742152960396 * (xx - yy),
        ]
        if levels > 3:
            comps += [
                0.5900435899266435 * y * (3.0 * xx - yy),
                2.890611442640554 * x * y * z,
                0.4570457994644658 * y * (5.0 * zz - 1.0),
                0.3731763325901154 * z * (5.0 * zz - 3.0),
                0.4570457994644658 * x * (5.0 * zz - 1.0),
                1.445305721320277 * z * (xx - yy),
                0.5900435899266435 * x * (xx - 3.0 * yy),
            ]
    # TODO(synk): levels == 5 (l=4 SH band) not implemented; wrapper asserts levels <= 4.
    return comps


def sh_render_kernel(sh_ref, dirs_ref, w_ref, out_ref, acc_ref, *, levels):
    """One (ray tile, sample tile) step.

    sh_ref (C, TS, TR), dirs_ref (3, TS, TR), w_ref (TS, TR),
    out_ref (3, TR), acc_ref (3, TR) f32 scratch (persists across sample tiles).
    """
    f32 = jnp.float32
    s_idx = pl.program_id(1)

    @pl.when(s_idx == 0)
    def _init():
        acc_ref[...] = jnp.zeros_like(acc_ref)

    x = dirs_ref[0].astype(f32)          # (TS, TR) — leading-axis index, lane-dense
    y = dirs_ref[1].astype(f32)
    z = dirs_ref[2].astype(f32)
    w = w_ref[...].astype(f32)           # (TS, TR)

    comps = _sh_components(x, y, z, levels)   # list of (TS, TR) f32, len = levels**2
    k = levels * levels

    for ch in range(3):
        acc = sh_ref[ch * k].astype(f32) * comps[0]
        for j in range(1, k):
            acc = acc + sh_ref[ch * k + j].astype(f32) * comps[j]   # dense VPU FMA
        rgb_ch = jax.nn.sigmoid(acc)                                # EUP
        # composite over this sample tile (sublane reduce) -> (TR,), accumulate in f32
        acc_ref[ch, :] = acc_ref[ch, :] + jnp.sum(w * rgb_ch, axis=0)

    @pl.when(s_idx == pl.num_programs(1) - 1)
    def _store():
        out_ref[...] = acc_ref[...].astype(out_ref.dtype)           # lane-dense store


def sh_renderer(sh, directions, weights, *, vmem_budget_bytes=16 * 1024 * 1024):
    """Pallas SHRenderer.forward (training mode, background_color='random', Sigmoid)."""
    *batch, S, C = sh.shape
    assert C % 3 == 0
    K = C // 3
    levels = int(round(math.sqrt(K)))
    assert levels * levels == K
    assert 1 <= levels <= 4, "levels > 4 (l=4 SH band) not implemented"

    R = math.prod(batch) if batch else 1
    sh_f = sh.reshape(R, S, C)
    dirs_f = directions.reshape(R, S, 3)
    w_f = weights.reshape(R, S)

    # --- lane-dense re-layout: rays on the 128-lane axis, samples on sublanes ---
    sh_t = jnp.transpose(sh_f, (2, 1, 0))      # (C, S, R)
    dirs_t = jnp.transpose(dirs_f, (2, 1, 0))  # (3, S, R)
    w_t = jnp.transpose(w_f, (1, 0))           # (S, R)

    # --- tile sizing from the (double-buffered) VMEM budget ---
    # bytes per (ray, sample) across all double-buffered input blocks
    bps = 2 * (C * sh.dtype.itemsize
               + 3 * directions.dtype.itemsize
               + weights.dtype.itemsize)

    r_pad = -(-R // _LANE) * _LANE
    # largest ray tile that still fits the budget with the minimum sample tile (8)
    tr_max = max(_LANE, (vmem_budget_bytes // (bps * _SUBLANE)) // _LANE * _LANE)
    tr = int(min(tr_max, 1024, r_pad))
    # keep >= 2 ray tiles when possible so the 'parallel' axis can shard over 2 TCs (v7x)
    if tr == r_pad and r_pad >= 2 * _LANE and (r_pad // 2) % _LANE == 0:
        tr = r_pad // 2
    r_pad = -(-r_pad // tr) * tr

    # sample tile: as many samples as fit the budget with this ray tile;
    # if everything fits, a single sample step (no S padding needed).
    ts_fit = max(_SUBLANE, (vmem_budget_bytes // (bps * tr)) // _SUBLANE * _SUBLANE)
    if ts_fit >= S:
        ts, s_pad = S, S
    else:
        ts = int(ts_fit)
        s_pad = -(-S // ts) * ts

    if r_pad != R or s_pad != S:
        pr, ps = r_pad - R, s_pad - S
        sh_t = jnp.pad(sh_t, ((0, 0), (0, ps), (0, pr)))
        dirs_t = jnp.pad(dirs_t, ((0, 0), (0, ps), (0, pr)))
        w_t = jnp.pad(w_t, ((0, ps), (0, pr)))   # zero weights => zero contribution

    needed = bps * tr * ts + 2 * 3 * tr * sh.dtype.itemsize + _SUBLANE * tr * 4
    vmem_limit = int(min(max(2 * needed, 32 << 20), 64 << 20))

    kernel = functools.partial(sh_render_kernel, levels=levels)
    out_t = pl.pallas_call(
        kernel,
        out_shape=jax.ShapeDtypeStruct((3, r_pad), sh.dtype),
        grid=(r_pad // tr, s_pad // ts),
        in_specs=[
            pl.BlockSpec((C, ts, tr), lambda i, s: (0, s, i)),
            pl.BlockSpec((3, ts, tr), lambda i, s: (0, s, i)),
            pl.BlockSpec((ts, tr), lambda i, s: (s, i)),
        ],
        out_specs=pl.BlockSpec((3, tr), lambda i, s: (0, i)),
        scratch_shapes=[pltpu.VMEM((3, tr), jnp.float32)],
        compiler_params=pltpu.CompilerParams(
            dimension_semantics=("parallel", "arbitrary"),
            vmem_limit_bytes=vmem_limit,
        ),
    )(sh_t, dirs_t, w_t)

    out = jnp.transpose(out_t[:, :R], (1, 0))                # (R, 3)
    return out.reshape(tuple(batch) + (3,))


def sh_renderer_ref(sh, directions, weights):
    """Pure-JAX reference (mirrors the PyTorch module, training mode, bg='random')."""
    *batch, S, C = sh.shape
    levels = int(round(math.sqrt(C // 3)))
    sh_r = sh.reshape(sh.shape[:-1] + (3, C // 3))
    x, y, z = directions[..., 0], directions[..., 1], directions[..., 2]
    comps = jnp.stack(_sh_components(x, y, z, levels), axis=-1)     # (*batch, S, L^2)
    rgb = jnp.sum(sh_r * comps[..., None, :], axis=-1)              # (*batch, S, 3)
    rgb = jax.nn.sigmoid(rgb)
    return jnp.sum(weights * rgb, axis=-2)                          # (*batch, 3)


if __name__ == "__main__":
    key = jax.random.PRNGKey(0)
    k1, k2, k3 = jax.random.split(key, 3)

    batch, S, levels = (4, 8), 16, 2
    C = 3 * levels * levels  # 12

    sh = jax.random.normal(k1, (*batch, S, C), dtype=jnp.float32)
    dirs = jax.random.normal(k2, (*batch, S, 3), dtype=jnp.float32)
    dirs = dirs / jnp.linalg.norm(dirs, axis=-1, keepdims=True)
    weights = jax.nn.softmax(
        jax.random.normal(k3, (*batch, S)), axis=-1
    )[..., None].astype(jnp.float32)

    out = jax.block_until_ready(sh_renderer(sh, dirs, weights))

    ref = sh_renderer_ref(sh, dirs, weights)
    assert out.shape == (*batch, 3)
    assert jnp.allclose(out, ref, atol=1e-5, rtol=1e-5)
    print("KERNEL_OK")
</pallas_src>

<mosaic_0001>
module attributes {stable_mosaic.version = 11 : i64} {
  func.func @sh_render_kernel(%arg0: i32, %arg1: i32, %arg2: memref<12x16x128xf32, #tpu.memory_space<vmem>>, %arg3: memref<3x16x128xf32, #tpu.memory_space<vmem>>, %arg4: memref<16x128xf32, #tpu.memory_space<vmem>>, %arg5: memref<3x128xf32, #tpu.memory_space<vmem>>, %arg6: memref<3x128xf32, #tpu.memory_space<vmem>>) attributes {dimension_semantics = [#tpu.dimension_semantics<parallel>, #tpu.dimension_semantics<arbitrary>], iteration_bounds = array<i64: 1, 1>, scalar_prefetch = 0 : i64, scratch_operands = 1 : i64, tpu.core_type = #tpu.core_type<tc>, window_params = [{transform_indices = @transform_0, window_bounds = array<i64: 12, 16, 128>}, {transform_indices = @transform_1, window_bounds = array<i64: 3, 16, 128>}, {transform_indices = @transform_2, window_bounds = array<i64: 16, 128>}, {transform_indices = @transform_3, window_bounds = array<i64: 3, 128>}]} {
    %c0_i32 = arith.constant 0 : i32
    %0 = arith.cmpi eq, %arg1, %c0_i32 : i32
    %1 = arith.extui %0 : i1 to i32
    %c0_i32_0 = arith.constant 0 : i32
    %2 = arith.cmpi ne, %1, %c0_i32_0 : i32
    scf.if %2 {
      %cst_59 = arith.constant 0.000000e+00 : f32
      %104 = vector.broadcast %cst_59 : f32 to vector<3x128xf32>
      %c0_60 = arith.constant 0 : index
      %c0_61 = arith.constant 0 : index
      %105 = vector.load %arg6[%c0_60, %c0_61] : memref<3x128xf32, #tpu.memory_space<vmem>>, vector<3x128xf32>
      tpu.vector_store %arg6[%c0_60, %c0_61], %104 {strides = array<i32>} : memref<3x128xf32, #tpu.memory_space<vmem>>, vector<3x128xf32>,
    } else {
    }
    %c0 = arith.constant 0 : index
    %c0_1 = arith.constant 0 : index
    %c0_2 = arith.constant 0 : index
    %3 = vector.load %arg3[%c0, %c0_1, %c0_2] : memref<3x16x128xf32, #tpu.memory_space<vmem>>, vector<1x16x128xf32>
    %4 = vector.shape_cast %3 : vector<1x16x128xf32> to vector<16x128xf32>
    %c1 = arith.constant 1 : index
    %c0_3 = arith.constant 0 : index
    %c0_4 = arith.constant 0 : index
    %5 = vector.load %arg3[%c1, %c0_3, %c0_4] : memref<3x16x128xf32, #tpu.memory_space<vmem>>, vector<1x16x128xf32>
    %6 = vector.shape_cast %5 : vector<1x16x128xf32> to vector<16x128xf32>
    %c2 = arith.constant 2 : index
    %c0_5 = arith.constant 0 : index
    %c0_6 = arith.constant 0 : index
    %7 = vector.load %arg3[%c2, %c0_5, %c0_6] : memref<3x16x128xf32, #tpu.memory_space<vmem>>, vector<1x16x128xf32>
    %8 = vector.shape_cast %7 : vector<1x16x128xf32> to vector<16x128xf32>
    %c0_7 = arith.constant 0 : index
    %c0_8 = arith.constant 0 : index
    %9 = vector.load %arg4[%c0_7, %c0_8] : memref<16x128xf32, #tpu.memory_space<vmem>>, vector<16x128xf32>
    %cst = arith.constant 0.282094806 : f32
    %10 = vector.broadcast %cst : f32 to vector<16x128xf32>
    %cst_9 = arith.constant 0.488602519 : f32
    %11 = vector.broadcast %cst_9 : f32 to vector<16x128xf32>
    %12 = arith.mulf %11, %6 : vector<16x128xf32>
    %cst_10 = arith.constant 0.488602519 : f32
    %13 = vector.broadcast %cst_10 : f32 to vector<16x128xf32>
    %14 = arith.mulf %13, %8 : vector<16x128xf32>
    %cst_11 = arith.constant 0.488602519 : f32
    %15 = vector.broadcast %cst_11 : f32 to vector<16x128xf32>
    %16 = arith.mulf %15, %4 : vector<16x128xf32>
    %c0_12 = arith.constant 0 : index
    %c0_13 = arith.constant 0 : index
    %c0_14 = arith.constant 0 : index
    %17 = vector.load %arg2[%c0_12, %c0_13, %c0_14] : memref<12x16x128xf32, #tpu.memory_space<vmem>>, vector<1x16x128xf32>
    %18 = vector.shape_cast %17 : vector<1x16x128xf32> to vector<16x128xf32>
    %19 = arith.mulf %18, %10 : vector<16x128xf32>
    %c1_15 = arith.constant 1 : index
    %c0_16 = arith.constant 0 : index
    %c0_17 = arith.constant 0 : index
    %20 = vector.load %arg2[%c1_15, %c0_16, %c0_17] : memref<12x16x128xf32, #tpu.memory_space<vmem>>, vector<1x16x128xf32>
    %21 = vector.shape_cast %20 : vector<1x16x128xf32> to vector<16x128xf32>
    %22 = arith.mulf %21, %12 : vector<16x128xf32>
    %23 = arith.addf %19, %22 : vector<16x128xf32>
    %c2_18 = arith.constant 2 : index
    %c0_19 = arith.constant 0 : index
    %c0_20 = arith.constant 0 : index
    %24 = vector.load %arg2[%c2_18, %c0_19, %c0_20] : memref<12x16x128xf32, #tpu.memory_space<vmem>>, vector<1x16x128xf32>
    %25 = vector.shape_cast %24 : vector<1x16x128xf32> to vector<16x128xf32>
    %26 = arith.mulf %25, %14 : vector<16x128xf32>
    %27 = arith.addf %23, %26 : vector<16x128xf32>
    %c3 = arith.constant 3 : index
    %c0_21 = arith.constant 0 : index
    %c0_22 = arith.constant 0 : index
    %28 = vector.load %arg2[%c3, %c0_21, %c0_22] : memref<12x16x128xf32, #tpu.memory_space<vmem>>, vector<1x16x128xf32>
    %29 = vector.shape_cast %28 : vector<1x16x128xf32> to vector<16x128xf32>
    %30 = arith.mulf %29, %16 : vector<16x128xf32>
    %31 = arith.addf %27, %30 : vector<16x128xf32>
    %32 = arith.negf %31 : vector<16x128xf32>
    %33 = math.exp %32 : vector<16x128xf32>
    %cst_23 = arith.constant 1.000000e+00 : f32
    %34 = vector.broadcast %cst_23 : f32 to vector<16x128xf32>
    %35 = arith.addf %34, %33 : vector<16x128xf32>
    %36 = arith.divf %34, %35 : vector<16x128xf32>
    %c0_24 = arith.constant 0 : index
    %c0_25 = arith.constant 0 : index
    %37 = vector.load %arg6[%c0_24, %c0_25] : memref<3x128xf32, #tpu.memory_space<vmem>>, vector<1x128xf32>
    %38 = vector.shape_cast %37 : vector<1x128xf32> to vector<128xf32>
    %39 = arith.mulf %9, %36 : vector<16x128xf32>
    %cst_26 = arith.constant dense<0.000000e+00> : vector<128xf32>
    %40 = vector.multi_reduction <add>, %39, %cst_26 [0] : vector<16x128xf32> to vector<128xf32>
    %41 = arith.addf %38, %40 : vector<128xf32>
    %c0_27 = arith.constant 0 : index
    %c0_28 = arith.constant 0 : index
    %42 = vector.load %arg6[%c0_27, %c0_28] : memref<3x128xf32, #tpu.memory_space<vmem>>, vector<1x128xf32>
    %43 = vector.shape_cast %42 : vector<1x128xf32> to vector<128xf32>
    %44 = vector.shape_cast %41 : vector<128xf32> to vector<1x128xf32>
    tpu.vector_store %arg6[%c0_27, %c0_28], %44 {strides = array<i32>} : memref<3x128xf32, #tpu.memory_space<vmem>>, vector<1x128xf32>,
    %c4 = arith.constant 4 : index
    %c0_29 = arith.constant 0 : index
    %c0_30 = arith.constant 0 : index
    %45 = vector.load %arg2[%c4, %c0_29, %c0_30] : memref<12x16x128xf32, #tpu.memory_space<vmem>>, vector<1x16x128xf32>
    %46 = vector.shape_cast %45 : vector<1x16x128xf32> to vector<16x128xf32>
    %47 = arith.mulf %46, %10 : vector<16x128xf32>
    %c5 = arith.constant 5 : index
    %c0_31 = arith.constant 0 : index
    %c0_32 = arith.constant 0 : index
    %48 = vector.load %arg2[%c5, %c0_31, %c0_32] : memref<12x16x128xf32, #tpu.memory_space<vmem>>, vector<1x16x128xf32>
    %49 = vector.shape_cast %48 : vector<1x16x128xf32> to vector<16x128xf32>
    %50 = arith.mulf %49, %12 : vector<16x128xf32>
    %51 = arith.addf %47, %50 : vector<16x128xf32>
    %c6 = arith.constant 6 : index
    %c0_33 = arith.constant 0 : index
    %c0_34 = arith.constant 0 : index
    %52 = vector.load %arg2[%c6, %c0_33, %c0_34] : memref<12x16x128xf32, #tpu.memory_space<vmem>>, vector<1x16x128xf32>
    %53 = vector.shape_cast %52 : vector<1x16x128xf32> to vector<16x128xf32>
    %54 = arith.mulf %53, %14 : vector<16x128xf32>
    %55 = arith.addf %51, %54 : vector<16x128xf32>
    %c7 = arith.constant 7 : index
    %c0_35 = arith.constant 0 : index
    %c0_36 = arith.constant 0 : index
    %56 = vector.load %arg2[%c7, %c0_35, %c0_36] : memref<12x16x128xf32, #tpu.memory_space<vmem>>, vector<1x16x128xf32>
    %57 = vector.shape_cast %56 : vector<1x16x128xf32> to vector<16x128xf32>
    %58 = arith.mulf %57, %16 : vector<16x128xf32>
    %59 = arith.addf %55, %58 : vector<16x128xf32>
    %60 = arith.negf %59 : vector<16x128xf32>
    %61 = math.exp %60 : vector<16x128xf32>
    %cst_37 = arith.constant 1.000000e+00 : f32
    %62 = vector.broadcast %cst_37 : f32 to vector<16x128xf32>
    %63 = arith.addf %62, %61 : vector<16x128xf32>
    %64 = arith.divf %62, %63 : vector<16x128xf32>
    %c1_38 = arith.constant 1 : index
    %c0_39 = arith.constant 0 : index
    %65 = vector.load %arg6[%c1_38, %c0_39] : memref<3x128xf32, #tpu.memory_space<vmem>>, vector<1x128xf32>
    %66 = vector.shape_cast %65 : vector<1x128xf32> to vector<128xf32>
    %67 = arith.mulf %9, %64 : vector<16x128xf32>
    %cst_40 = arith.constant dense<0.000000e+00> : vector<128xf32>
    %68 = vector.multi_reduction <add>, %67, %cst_40 [0] : vector<16x128xf32> to vector<128xf32>
    %69 = arith.addf %66, %68 : vector<128xf32>
    %c1_41 = arith.constant 1 : index
    %c0_42 = arith.constant 0 : index
    %70 = vector.load %arg6[%c1_41, %c0_42] : memref<3x128xf32, #tpu.memory_space<vmem>>, vector<1x128xf32>
    %71 = vector.shape_cast %70 : vector<1x128xf32> to vector<128xf32>
    %72 = vector.shape_cast %69 : vector<128xf32> to vector<1x128xf32>
    tpu.vector_store %arg6[%c1_41, %c0_42], %72 {strides = array<i32>} : memref<3x128xf32, #tpu.memory_space<vmem>>, vector<1x128xf32>,
    %c8 = arith.constant 8 : index
    %c0_43 = arith.constant 0 : index
    %c0_44 = arith.constant 0 : index
    %73 = vector.load %arg2[%c8, %c0_43, %c0_44] : memref<12x16x128xf32, #tpu.memory_space<vmem>>, vector<1x16x128xf32>
    %74 = vector.shape_cast %73 : vector<1x16x128xf32> to vector<16x128xf32>
    %75 = arith.mulf %74, %10 : vector<16x128xf32>
    %c9 = arith.constant 9 : index
    %c0_45 = arith.constant 0 : index
    %c0_46 = arith.constant 0 : index
    %76 = vector.load %arg2[%c9, %c0_45, %c0_46] : memref<12x16x128xf32, #tpu.memory_space<vmem>>, vector<1x16x128xf32>
    %77 = vector.shape_cast %76 : vector<1x16x128xf32> to vector<16x128xf32>
    %78 = arith.mulf %77, %12 : vector<16x128xf32>
    %79 = arith.addf %75, %78 : vector<16x128xf32>
    %c10 = arith.constant 10 : index
    %c0_47 = arith.constant 0 : index
    %c0_48 = arith.constant 0 : index
    %80 = vector.load %arg2[%c10, %c0_47, %c0_48] : memref<12x16x128xf32, #tpu.memory_space<vmem>>, vector<1x16x128xf32>
    %81 = vector.shape_cast %80 : vector<1x16x128xf32> to vector<16x128xf32>
    %82 = arith.mulf %81, %14 : vector<16x128xf32>
    %83 = arith.addf %79, %82 : vector<16x128xf32>
    %c11 = arith.constant 11 : index
    %c0_49 = arith.constant 0 : index
    %c0_50 = arith.constant 0 : index
    %84 = vector.load %arg2[%c11, %c0_49, %c0_50] : memref<12x16x128xf32, #tpu.memory_space<vmem>>, vector<1x16x128xf32>
    %85 = vector.shape_cast %84 : vector<1x16x128xf32> to vector<16x128xf32>
    %86 = arith.mulf %85, %16 : vector<16x128xf32>
    %87 = arith.addf %83, %86 : vector<16x128xf32>
    %88 = arith.negf %87 : vector<16x128xf32>
    %89 = math.exp %88 : vector<16x128xf32>
    %cst_51 = arith.constant 1.000000e+00 : f32
    %90 = vector.broadcast %cst_51 : f32 to vector<16x128xf32>
    %91 = arith.addf %90, %89 : vector<16x128xf32>
    %92 = arith.divf %90, %91 : vector<16x128xf32>
    %c2_52 = arith.constant 2 : index
    %c0_53 = arith.constant 0 : index
    %93 = vector.load %arg6[%c2_52, %c0_53] : memref<3x128xf32, #tpu.memory_space<vmem>>, vector<1x128xf32>
    %94 = vector.shape_cast %93 : vector<1x128xf32> to vector<128xf32>
    %95 = arith.mulf %9, %92 : vector<16x128xf32>
    %cst_54 = arith.constant dense<0.000000e+00> : vector<128xf32>
    %96 = vector.multi_reduction <add>, %95, %cst_54 [0] : vector<16x128xf32> to vector<128xf32>
    %97 = arith.addf %94, %96 : vector<128xf32>
    %c2_55 = arith.constant 2 : index
    %c0_56 = arith.constant 0 : index
    %98 = vector.load %arg6[%c2_55, %c0_56] : memref<3x128xf32, #tpu.memory_space<vmem>>, vector<1x128xf32>
    %99 = vector.shape_cast %98 : vector<1x128xf32> to vector<128xf32>
    %100 = vector.shape_cast %97 : vector<128xf32> to vector<1x128xf32>
    tpu.vector_store %arg6[%c2_55, %c0_56], %100 {strides = array<i32>} : memref<3x128xf32, #tpu.memory_space<vmem>>, vector<1x128xf32>,
    %c0_i32_57 = arith.constant 0 : i32
    %101 = arith.cmpi eq, %arg1, %c0_i32_57 : i32
    %102 = arith.extui %101 : i1 to i32
    %c0_i32_58 = arith.constant 0 : i32
    %103 = arith.cmpi ne, %102, %c0_i32_58 : i32
    scf.if %103 {
      %c0_59 = arith.constant 0 : index
      %c0_60 = arith.constant 0 : index
      %104 = vector.load %arg6[%c0_59, %c0_60] : memref<3x128xf32, #tpu.memory_space<vmem>>, vector<3x128xf32>
      %c0_61 = arith.constant 0 : index
      %c0_62 = arith.constant 0 : index
      %105 = vector.load %arg5[%c0_61, %c0_62] : memref<3x128xf32, #tpu.memory_space<vmem>>, vector<3x128xf32>
      tpu.vector_store %arg5[%c0_61, %c0_62], %104 {strides = array<i32>} : memref<3x128xf32, #tpu.memory_space<vmem>>, vector<3x128xf32>,
    } else {
    }
    return
  }
  func.func @transform_0(%arg0: i32, %arg1: i32) -> (i32, i32, i32) {
    %c0_i32 = arith.constant 0 : i32
    %c0_i32_0 = arith.constant 0 : i32
    return %c0_i32, %arg1, %arg0 : i32, i32, i32
  }
  func.func @transform_1(%arg0: i32, %arg1: i32) -> (i32, i32, i32) {
    %c0_i32 = arith.constant 0 : i32
    %c0_i32_0 = arith.constant 0 : i32
    return %c0_i32, %arg1, %arg0 : i32, i32, i32
  }
  func.func @transform_2(%arg0: i32, %arg1: i32) -> (i32, i32) {
    %c0_i32 = arith.constant 0 : i32
    return %arg1, %arg0 : i32, i32
  }
  func.func @transform_3(%arg0: i32, %arg1: i32) -> (i32, i32) {
    %c0_i32 = arith.constant 0 : i32
    %c0_i32_0 = arith.constant 0 : i32
    return %c0_i32, %arg0 : i32, i32
  }
}

</mosaic_0001>

<bundles_post_ra>
// kernel: tpu_custom_call.1
= control target key start
LH: loop header
LB: loop body
LE: loop exit
PB: predicated region body
PF: predicated region fallthrough
CT: control target
= control target key end

     0   :  { %8 = vsyncpa [#allocation4], 0  ;;  %s479_s0 = inlined_call_operand.hbm [shape: f32[12,16,128], index: 0, kind: input, shape index: {}]   ;;  %s480_s1 = inlined_call_operand.hbm [shape: f32[3,16,128], index: 1, kind: input, shape index: {}]   ;;  %s481_s2 = inlined_call_operand.hbm [shape: f32[16,128], index: 2, kind: input, shape index: {}]   ;;  %s482_s3 = inlined_call_operand.hbm [shape: f32[3,128], index: 3, kind: output, shape index: {}]  }
   0x1   :  { %9 = vsyncpa [#allocation7], 0 }
   0x2   :  { %10 = vsyncpa [#allocation5], 0  ;;  %s378_s12 = smov [#allocation6]   ;;  %s379_s14 = smov [#allocation3]  }
   0x3   :  { %s28_s13 = sshll.u32 %s378_s12, 4  ;;  %s16_s15 = sshll.u32 %s379_s14, 4  ;;  %s29_s13 = int_to_ptr.vmem [resolvable:$true] %s28_s13  ;;  %s405_s15 = int_to_ptr.vmem [resolvable:$true] %s16_s15 }
   0x4   :  { %s284_s18 = scalar_lea.hbm %s480_s1, 768 }
   0x5   :  { %p285_p0 = scmp.ne.s32.totalorder %s480_s1, %s284_s18  ;;  %p288_p1 = scmp.lt.u32.totalorder %s284_s18, %s480_s1 }
   0x7   :  { %p290_p2 = pnand %p288_p1, %p285_p0 }
   0x9   :  { %293 = shalt.err (!%p290_p2)
}
   0xa   :  { %s294_s23 = scalar_lea.vmem %s29_s13, 768  ;;  %p299_p4 = scmp.lt.s32.totalorder %s29_s13, %s29_s13 }
   0xb   :  { %p295_p3 = scmp.ne.s32.totalorder %s29_s13, %s294_s23  ;;  %p300_p5 = scmp.lt.s32.totalorder %s294_s23, %s294_s23 }
   0xd   :  { %p301_p6 = por %p300_p5, %p299_p4 }
   0xf   :  { %p302_p7 = pnand %p301_p6, %p295_p3 }
  0x11   :  { %305 = shalt.err (!%p302_p7)
}
  0x12   :  { %s380_s24 = smov 128   ;;  %s381_s25 = smov 8  }
  0x13   :  { %34 = dma.hbm_to_vmem [thread:$0]  %s480_s1, 768, %s29_s13, [#allocation7], %s380_s24, %s380_s24, %s381_s25  }
  0x14   :  { %s306_s30 = scalar_lea.hbm %s479_s0, 3072 }
  0x15   :  { %p307_p8 = scmp.ne.s32.totalorder %s479_s0, %s306_s30  ;;  %p310_p9 = scmp.lt.u32.totalorder %s306_s30, %s479_s0 }
  0x17   :  { %p312_p10 = pnand %p310_p9, %p307_p8 }
  0x19   :  { %315 = shalt.err (!%p312_p10)
}
  0x1a   :  { %s316_s8 = scalar_lea.vmem %s405_s15, 3072  ;;  %p321_p12 = scmp.lt.s32.totalorder %s405_s15, %s405_s15 }
  0x1b   :  { %p317_p11 = scmp.ne.s32.totalorder %s405_s15, %s316_s8  ;;  %p322_p13 = scmp.lt.s32.totalorder %s316_s8, %s316_s8 }
  0x1d   :  { %p323_p0 = por %p322_p13, %p321_p12 }
  0x1f   :  { %p324_p1 = pnand %p323_p0, %p317_p11 }
  0x21   :  { %327 = shalt.err (!%p324_p1)
}
  0x22   :  { %22 = dma.hbm_to_vmem [thread:$0]  %s479_s0, 3072, %s405_s15, [#allocation4], %s380_s24, %s380_s24, %s381_s25  }
  0x23   :  { %s382_s10 = smov [#allocation8]   ;;  %s328_s14 = scalar_lea.hbm %s481_s2, 256 }
  0x24   :  { %s40_s11 = sshll.u32 %s382_s10, 4  ;;  %p329_p2 = scmp.ne.s32.totalorder %s481_s2, %s328_s14  ;;  %s41_s11 = int_to_ptr.vmem [resolvable:$true] %s40_s11 }
  0x25   :  { %p332_p3 = scmp.lt.u32.totalorder %s328_s14, %s481_s2 }
  0x27   :  { %p334_p4 = pnand %p332_p3, %p329_p2 }
  0x29   :  { %337 = shalt.err (!%p334_p4)
}
  0x2a   :  { %s338_s20 = scalar_lea.vmem %s41_s11, 256  ;;  %p343_p6 = scmp.lt.s32.totalorder %s41_s11, %s41_s11 }
  0x2b   :  { %p339_p5 = scmp.ne.s32.totalorder %s41_s11, %s338_s20  ;;  %p344_p7 = scmp.lt.s32.totalorder %s338_s20, %s338_s20 }
  0x2d   :  { %p345_p8 = por %p344_p7, %p343_p6 }
  0x2f   :  { %p346_p9 = pnand %p345_p8, %p339_p5 }
  0x31   :  { %349 = shalt.err (!%p346_p9)
}
  0x32   :  { %46 = dma.hbm_to_vmem [thread:$0]  %s481_s2, 256, %s41_s11, [#allocation7], %s380_s24, %s380_s24, %s381_s25  }
  0x33   :  { %372 = dma.done.wait [#allocation4], 3072  }
  0x34   :  { %373 = vsyncadd [#allocation4], 4294964224 }
  0x35   :  { %374 = dma.done.wait [#allocation7], 1024  }
  0x36   :  { %375 = vsyncadd [#allocation7], 4294966272  ;;  %v383_v0 = vmov 0.0   ;;  %v61_v1 = vld [vmem:[#allocation6] sm:$0xff]  ;;  %v62_v2 = vld [vmem:[#allocation6 + $0x8] sm:$0xff]  ;;  %s384_s2 = smov [#allocation9]  }
  0x37   :  { %60 = vst [vmem:[#allocation2] sm:$0x7] %v383_v0  ;;  %v64_v3 = vld [vmem:[#allocation6 + $0x10] sm:$0xff]  ;;  %v65_v4 = vld [vmem:[#allocation6 + $0x18] sm:$0xff]  ;;  %v67_v5 = vld [vmem:[#allocation6 + $0x20] sm:$0xff]  ;;  %s237_s21 = sshll.u32 %s384_s2, 4  ;;  %s238_s21 = int_to_ptr.vmem [resolvable:$true] %s237_s21 }
  0x38   :  { %v68_v6 = vld [vmem:[#allocation6 + $0x28] sm:$0xff]  ;;  %v71_v7 = vmul.f32 0.48860252, %v64_v3  ;;  %v72_v8 = vmul.f32 0.48860252, %v65_v4  ;;  %v77_v13 = vld [vmem:[#allocation3] sm:$0xff]  ;;  %p355_p11 = scmp.lt.s32.totalorder %s238_s21, %s238_s21 }
  0x39   :  { %v73_v9 = vmul.f32 0.48860252, %v67_v5  ;;  %v74_v10 = vmul.f32 0.48860252, %v68_v6  ;;  %v457_v11 = vmul.f32 0.48860252, %v61_v1 }
  0x3a   :  { %v459_v12 = vmul.f32 0.48860252, %v62_v2  ;;  %v78_v14 = vld [vmem:[#allocation3 + $0x8] sm:$0xff]  ;;  %v82_v15 = vld [vmem:[#allocation3 + $0x10] sm:$0xff]  ;;  %v79_v16 = vmul.f32 0.2820948, %v77_v13 }
  0x3b   :  { %v80_v17 = vmul.f32 0.2820948, %v78_v14  ;;  %v83_v18 = vld [vmem:[#allocation3 + $0x18] sm:$0xff]  ;;  %v84_v19 = vmul.f32 %v82_v15, %v71_v7  ;;  %v89_v20 = vld [vmem:[#allocation3 + $0x20] sm:$0xff]  ;;  %v90_v22 = vld [vmem:[#allocation3 + $0x28] sm:$0xff]  ;;  %s350_s22 = scalar_lea.vmem %s238_s21, 64 }
  0x3c   :  { %v85_v21 = vmul.f32 %v83_v18, %v72_v8  ;;  %v91_v23 = vmul.f32 %v89_v20, %v73_v9  ;;  %v96_v24 = vld [vmem:[#allocation3 + $0x30] sm:$0xff]  ;;  %v97_v25 = vld [vmem:[#allocation3 + $0x38] sm:$0xff]  ;;  %v92_v27 = vmul.f32 %v90_v22, %v74_v10  ;;  %v127_v29 = vld [vmem:[#allocation3 + $0x40] sm:$0xff]  ;;  %p351_p10 = scmp.ne.s32.totalorder %s238_s21, %s350_s22  ;;  %p356_p12 = scmp.lt.s32.totalorder %s350_s22, %s350_s22 }
  0x3d   :  { %v86_v26 = vadd.f32 %v84_v19, %v79_v16  ;;  %v98_v28 = vmul.f32 %v96_v24, %v457_v11  ;;  %v128_v30 = vld [vmem:[#allocation3 + $0x48] sm:$0xff]  ;;  %v99_v32 = vmul.f32 %v97_v25, %v459_v12  ;;  %v129_v33 = vmul.f32 0.2820948, %v127_v29  ;;  %v132_v35 = vld [vmem:[#allocation3 + $0x50] sm:$0xff]  ;;  %v133_v36 = vld [vmem:[#allocation3 + $0x58] sm:$0xff] }
  0x3e   :  { %v87_v31 = vadd.f32 %v85_v21, %v80_v17  ;;  %v130_v34 = vmul.f32 0.2820948, %v128_v30  ;;  %v134_v38 = vmul.f32 %v132_v35, %v71_v7  ;;  %v135_v39 = vmul.f32 %v133_v36, %v72_v8  ;;  %v139_v40 = vld [vmem:[#allocation3 + $0x60] sm:$0xff]  ;;  %v140_v41 = vld [vmem:[#allocation3 + $0x68] sm:$0xff]  ;;  %v146_v42 = vld [vmem:[#allocation3 + $0x70] sm:$0xff]  ;;  %p357_p13 = por %p356_p12, %p355_p11 }
  0x3f   :  { %v93_v37 = vadd.f32 %v91_v23, %v86_v26  ;;  %v141_v44 = vmul.f32 %v139_v40, %v73_v9  ;;  %v142_v45 = vmul.f32 %v140_v41, %v74_v10  ;;  %v147_v46 = vld [vmem:[#allocation3 + $0x78] sm:$0xff]  ;;  %v148_v47 = vmul.f32 %v146_v42, %v457_v11  ;;  %v177_v48 = vld [vmem:[#allocation3 + $0x80] sm:$0xff]  ;;  %v178_v53 = vld [vmem:[#allocation3 + $0x88] sm:$0xff] }
  0x40   :  { %v94_v43 = vadd.f32 %v92_v27, %v87_v31  ;;  %v136_v50 = vadd.f32 %v134_v38, %v129_v33  ;;  %v137_v51 = vadd.f32 %v135_v39, %v130_v34  ;;  %v149_v52 = vmul.f32 %v147_v46, %v459_v12  ;;  %v182_v54 = vld [vmem:[#allocation3 + $0x90] sm:$0xff]  ;;  %v183_v55 = vld [vmem:[#allocation3 + $0x98] sm:$0xff]  ;;  %v189_v60 = vld [vmem:[#allocation3 + $0xa0] sm:$0xff]  ;;  %p358_p0 = pnand %p357_p13, %p351_p10 }
  0x41   :  { %v100_v49 = vadd.f32 %v98_v28, %v93_v37  ;;  %v179_v57 = vmul.f32 0.2820948, %v177_v48  ;;  %v180_v58 = vmul.f32 0.2820948, %v178_v53  ;;  %v184_v59 = vmul.f32 %v182_v54, %v71_v7  ;;  %v190_v61 = vld [vmem:[#allocation3 + $0xa8] sm:$0xff]  ;;  %v196_v2 = vld [vmem:[#allocation3 + $0xb0] sm:$0xff] }
  0x42   :  { %v101_v56 = vadd.f32 %v99_v32, %v94_v43  ;;  %v143_v63 = vadd.f32 %v141_v44, %v136_v50  ;;  %v144_v0 = vadd.f32 %v142_v45, %v137_v51  ;;  %v185_v1 = vmul.f32 %v183_v55, %v72_v8  ;;  %v197_v3 = vld [vmem:[#allocation3 + $0xb8] sm:$0xff]  ;;  %v69_v33 = vld [vmem:[#allocation8] sm:$0xff] }
  0x43   :  { %v247_v62 = vmul.f32 -1.442695, %v100_v49  ;;  %v186_v5 = vadd.f32 %v184_v59, %v179_v57  ;;  %v191_v6 = vmul.f32 %v189_v60, %v73_v9  ;;  %v192_v13 = vmul.f32 %v190_v61, %v74_v10  ;;  %v70_v34 = vld [vmem:[#allocation8 + $0x8] sm:$0xff] }
  0x44   :  { %v248_v4 = vmul.f32 -1.442695, %v101_v56  ;;  %v150_v14 = vadd.f32 %v148_v47, %v143_v63  ;;  %v151_v15 = vadd.f32 %v149_v52, %v144_v0  ;;  %v187_v16 = vadd.f32 %v185_v1, %v180_v58  ;;  %v114_v59 = vld [vmem:[#allocation2] sm:$0x1] }
  0x45   :  { %260 = vpow2.f32 %v247_v62  ;;  %v193_v17 = vadd.f32 %v191_v6, %v186_v5  ;;  %v198_v7 = vmul.f32 %v196_v2, %v457_v11  ;;  %v199_v18 = vmul.f32 %v197_v3, %v459_v12  ;;  %v164_v2 = vld [vmem:[#allocation2 + $0x1] sm:$0x1] }
  0x46   :  { %262 = vpow2.f32 %v248_v4  ;;  %v249_v19 = vmul.f32 -1.442695, %v150_v14  ;;  %v250_v20 = vmul.f32 -1.442695, %v151_v15  ;;  %v194_v21 = vadd.f32 %v192_v13, %v187_v16  ;;  %v214_v13 = vld [vmem:[#allocation2 + $0x2] sm:$0x1] }
  0x47   :  { %v200_v8 = vadd.f32 %v198_v7, %v193_v17 }
  0x48   :  { %264 = vpow2.f32 %v249_v19  ;;  %v201_v22 = vadd.f32 %v199_v18, %v194_v21 }
  0x49   :  { %266 = vpow2.f32 %v250_v20  ;;  %v251_v23 = vmul.f32 -1.442695, %v200_v8 }
  0x4a   :  { %v252_v9 = vmul.f32 -1.442695, %v201_v22 }
  0x4b   :  { %268 = vpow2.f32 %v251_v23 }
  0x4c   :  { %270 = vpow2.f32 %v252_v9 }
  0x4f   :  { %v261_v10 = vpop.eup %260 }
  0x50   :  { %v263_v24 = vpop.eup %262  ;;  %v108_v25 = vadd.f32 1.0, %v261_v10 }
  0x51   :  { %v109_v26 = vadd.f32 1.0, %v263_v24 }
  0x52   :  { %272 = vrcp.f32 %v108_v25  ;;  %v265_v27 = vpop.eup %264 }
  0x53   :  { %274 = vrcp.f32 %v109_v26  ;;  %v267_v11 = vpop.eup %266  ;;  %v158_v12 = vadd.f32 1.0, %v265_v27 }
  0x54   :  { %v159_v28 = vadd.f32 1.0, %v267_v11 }
  0x55   :  { %v269_v29 = vpop.eup %268  ;;  %276 = vrcp.f32 %v158_v12 }
  0x56   :  { %v271_v30 = vpop.eup %270  ;;  %278 = vrcp.f32 %v159_v28  ;;  %v208_v31 = vadd.f32 1.0, %v269_v29 }
  0x57   :  { %v209_v32 = vadd.f32 1.0, %v271_v30 }
  0x58   :  { %280 = vrcp.f32 %v208_v31 }
  0x59   :  { %282 = vrcp.f32 %v209_v32 }
  0x5c   :  { %v273_v35 = vpop.eup %272 }
  0x5d   :  { %v275_v36 = vpop.eup %274  ;;  %v115_v37 = vmul.f32 %v273_v35, %v69_v33 }
  0x5e   :  { %v116_v38 = vmul.f32 %v275_v36, %v70_v34 }
  0x5f   :  { %v277_v39 = vpop.eup %276 }
  0x60   :  { %v117_v40 = vadd.f32 %v116_v38, %v115_v37  ;;  %v279_v41 = vpop.eup %278  ;;  %v165_v42 = vmul.f32 %v277_v39, %v69_v33 }
  0x61   :  { %v166_v44 = vmul.f32 %v279_v41, %v70_v34 }
  0x62   :  { %v118_v43 = vrot.slane %v117_v40, 4  ;;  %v281_v45 = vpop.eup %280 }
  0x63   :  { %v283_v46 = vpop.eup %282  ;;  %v167_v48 = vadd.f32 %v166_v44, %v165_v42  ;;  %v215_v49 = vmul.f32 %v281_v45, %v69_v33 }
  0x64   :  { %v119_v47 = vadd.f32 %v118_v43, %v117_v40  ;;  %v216_v50 = vmul.f32 %v283_v46, %v70_v34 }
  0x65   :  { %v168_v52 = vrot.slane %v167_v48, 4 }
  0x66   :  { %v120_v51 = vrot.slane %v119_v47, 2  ;;  %v217_v53 = vadd.f32 %v216_v50, %v215_v49 }
  0x67   :  { %v169_v55 = vadd.f32 %v168_v52, %v167_v48 }
  0x68   :  { %v121_v54 = vadd.f32 %v120_v51, %v119_v47  ;;  %v218_v56 = vrot.slane %v217_v53, 4 }
  0x69   :  { %v170_v58 = vrot.slane %v169_v55, 2 }
  0x6a   :  { %v122_v57 = vrot.slane %v121_v54, 1  ;;  %v219_v60 = vadd.f32 %v218_v56, %v217_v53 }
  0x6b   :  { %v171_v62 = vadd.f32 %v170_v58, %v169_v55 }
  0x6c   :  { %v123_v61 = vadd.f32 %v122_v57, %v121_v54  ;;  %v220_v63 = vrot.slane %v219_v60, 2 }
  0x6d   :  { %v172_v1 = vrot.slane %v171_v62, 1 }
  0x6e   :  { %v124_v0 = vadd.f32 %v123_v61, %v114_v59  ;;  %v221_v3 = vadd.f32 %v220_v63, %v219_v60 }
  0x6f   :  { %v173_v4 = vadd.f32 %v172_v1, %v171_v62 }
  0x70   :  { %125 = vst [vmem:[#allocation2] sm:$0x1] %v124_v0  ;;  %v222_v5 = vrot.slane %v221_v3, 1 }
  0x71   :  { %v174_v6 = vadd.f32 %v173_v4, %v164_v2 }
  0x72   :  { %v223_v14 = vadd.f32 %v222_v5, %v221_v3 }
  0x73   :  { %175 = vst [vmem:[#allocation2 + $0x1] sm:$0x1] %v174_v6 }
  0x74   :  { %v224_v15 = vadd.f32 %v223_v14, %v214_v13 }
  0x76   :  { %225 = vst [vmem:[#allocation2 + $0x2] sm:$0x1] %v224_v15 }
  0x7d   :  { %v229_v16 = vld [vmem:[#allocation2] sm:$0x7] }
  0x7e   :  { %230 = vst [vmem:[#allocation9] sm:$0x7] %v229_v16 }
  0x7f   :  { %361 = shalt.err (!%p358_p0)
}
  0x80   :  { %s362_s25 = scalar_lea.hbm %s482_s3, 64 }
  0x81   :  { %p363_p1 = scmp.ne.s32.totalorder %s482_s3, %s362_s25  ;;  %p366_p2 = scmp.lt.u32.totalorder %s362_s25, %s482_s3 }
  0x83   :  { %p368_p3 = pnand %p366_p2, %p363_p1 }
  0x85   :  { %371 = shalt.err (!%p368_p3)
}
  0x86   :  { %240 = dma.vmem_to_hbm [thread:$0]  %s238_s21, 64, %s482_s3, [#allocation5]  }
  0x87   :  { %376 = dma.done.wait [#allocation5], 64  }
  0x88   :  { %377 = vsyncadd [#allocation5], 4294967232 }
  0x89   :  { %244 = vsyncpa [#allocation4], 1 }
  0x8a   :  { %245 = vsyncpa [#allocation7], 1 }
  0x8b   :  { %246 = vsyncpa [#allocation5], 1 }

</bundles_post_ra>
